<compile_context>
chip_gen: v7x
topology: tpu7x:2x2x1
jax: 0.10.0
libtpu: 0.0.40
codegen_flags: <defaults>
</compile_context>

<pallas_src>
import jax
import jax.numpy as jnp
from jax import lax
from jax.experimental import pallas as pl
from jax.experimental.pallas import tpu as pltpu


def _vmem_limit(nbytes):
    # Stay below v7x's 64 MiB physical VMEM; never request less than the need.
    return int(min(56 * 1024 * 1024, max(int(nbytes) + (4 << 20), 16 << 20)))


# ------------------- kernel 1: fused entity -> relation projection ----------

def _proj_kernel(xe_ref, w_ref, out_ref):
    # (tile_n, de) @ (de, 2*dr) -> (tile_n, 2*dr): one MXU pass, f32 accumulate,
    # lane-dense (>=64 wide) output store.
    out_ref[...] = jnp.dot(xe_ref[...], w_ref[...],
                           preferred_element_type=jnp.float32).astype(out_ref.dtype)


def gat_project(x_e, w_cat, *, tile_n=None):
    """x_e: (N, e_hidden); w_cat: (e_hidden, 2*r_hidden) = [W_h^T | W_t^T]."""
    n, de = x_e.shape
    dcat = w_cat.shape[1]
    itemsize = x_e.dtype.itemsize
    w_bytes = 2 * de * dcat * itemsize              # weight (double-buffered)
    if tile_n is None:
        budget = 40 * 1024 * 1024                   # fits every chip's VMEM
        per_row = 2 * (de + dcat) * itemsize        # double-buffered x + out rows
        cap = max(8, (budget - w_bytes) // max(per_row, 1))
        tile_n = int(min(n, 2048, cap))
        tile_n = max(8, (tile_n // 8) * 8)
    if tile_n >= n:
        tile_n = n
    grid = (pl.cdiv(n, tile_n),)
    vlim = _vmem_limit(w_bytes + 2 * tile_n * (de + dcat) * itemsize)
    cost = pl.CostEstimate(
        flops=int(2 * n * de * dcat),
        transcendentals=0,
        bytes_accessed=int((n * de + de * dcat + n * dcat) * itemsize))
    return pl.pallas_call(
        _proj_kernel,
        out_shape=jax.ShapeDtypeStruct((n, dcat), x_e.dtype),
        grid=grid,
        in_specs=[
            pl.BlockSpec((tile_n, de), lambda i: (i, 0)),
            # Constant index_map -> fetched once, kept resident across the grid.
            # TODO(synk): pipeline_mode=pl.Buffered(1) would drop its second
            # buffer (matters on v7x for large de*dr); left at default here.
            pl.BlockSpec((de, dcat), lambda i: (0, 0)),
        ],
        out_specs=pl.BlockSpec((tile_n, dcat), lambda i: (i, 0)),
        compiler_params=pltpu.CompilerParams(
            dimension_semantics=("parallel",),
            vmem_limit_bytes=vlim),
        cost_estimate=cost,
    )(x_e, w_cat)


# --------- kernel 2: edge-tiled gather + online segment softmax + scatter ----

def _edge_kernel(eh_sm, et_sm,                     # scalar-prefetched edge indices (SMEM)
                 rel_ref,                          # (1, TE) int32, lane-dense
                 xh_ref, xt_ref,                   # (N, Dr) resident in VMEM
                 aoh_ref, aot_ref,                 # (2, Dr) attention head rows
                 out_ref,                          # (R, Dr)
                 gh_ref, gt_ref,                   # (TE, Dr) gather scratch
                 m1_ref, l1_ref, m2_ref, l2_ref,   # (R, 1) running max / denominator
                 acc1_ref, acc2_ref):              # (R, Dr) running numerators
    f32 = jnp.float32
    neg = f32(-1e30)
    i = pl.program_id(0)
    nt = pl.num_programs(0)
    te = gh_ref.shape[0]
    n_rel = out_ref.shape[0]

    @pl.when(i == 0)
    def _init():
        m1_ref[...] = jnp.full(m1_ref.shape, neg, f32)
        m2_ref[...] = jnp.full(m2_ref.shape, neg, f32)
        l1_ref[...] = jnp.zeros(l1_ref.shape, f32)
        l2_ref[...] = jnp.zeros(l2_ref.shape, f32)
        acc1_ref[...] = jnp.zeros(acc1_ref.shape, f32)
        acc2_ref[...] = jnp.zeros(acc2_ref.shape, f32)

    # ---- real gather: x_r_h[eh[k]] / x_r_t[et[k]] for this edge tile.
    # TODO(synk): indices are not bounds-checked (torch indexing would raise);
    # out-of-range ids would read stale VMEM.
    base = i * te

    def _gather(j, carry):
        h = eh_sm[base + j]
        t = et_sm[base + j]
        gh_ref[pl.ds(j, 1), :] = xh_ref[pl.ds(h, 1), :]
        gt_ref[pl.ds(j, 1), :] = xt_ref[pl.ds(t, 1), :]
        return carry

    lax.fori_loop(0, te, _gather, 0, unroll=min(8, te))

    gh = gh_ref[...]
    gt = gt_ref[...]

    # ---- per-edge attention logits, directly in lane-dense (2, TE) layout:
    #   row 0 = e1 = a_h1.x_r_h[eh] + a_h2.x_r_t[et]
    #   row 1 = e2 = a_t1.x_r_h[eh] + a_t2.x_r_t[et]
    dimnums = (((1,), (1,)), ((), ()))             # contract the Dr axes
    e_rows = (lax.dot_general(aoh_ref[...], gh, dimnums, preferred_element_type=f32)
              + lax.dot_general(aot_ref[...], gt, dimnums, preferred_element_type=f32))
    z = jnp.where(e_rows > 0, e_rows, f32(0.01) * e_rows)   # leaky_relu (slope 0.01)
    z1 = z[0:1, :]
    z2 = z[1:2, :]

    # ---- relation membership, built once per tile, only in (R, TE) layout.
    rid = lax.broadcasted_iota(jnp.int32, (n_rel, te), 0)
    member = rel_ref[...] == rid                   # padded edges (rel == R) match nothing

    def _online_update(z_row, m_ref, l_ref, acc_ref, feats):
        masked = jnp.where(member, z_row, neg)                      # (R, TE)
        m_old = m_ref[...]                                          # (R, 1)
        m_new = jnp.maximum(m_old, jnp.max(masked, axis=1, keepdims=True))
        scale = jnp.exp(m_old - m_new)                              # (R, 1)
        # alpha folded straight into the scatter matrix.
        p = jnp.exp(jnp.where(member, z_row - m_new, neg))          # (R, TE)
        l_ref[...] = l_ref[...] * scale + jnp.sum(p, axis=1, keepdims=True)
        acc_ref[...] = acc_ref[...] * scale + jnp.dot(
            p, feats.astype(f32), preferred_element_type=f32)       # (R, Dr)
        m_ref[...] = m_new

    _online_update(z1, m1_ref, l1_ref, acc1_ref, gh)
    _online_update(z2, m2_ref, l2_ref, acc2_ref, gt)

    @pl.when(i == nt - 1)
    def _finalize():
        l1 = l1_ref[...]
        l2 = l2_ref[...]
        inv1 = jnp.where(l1 > 0, 1.0 / jnp.maximum(l1, f32(1e-30)), 0.0)
        inv2 = jnp.where(l2 > 0, 1.0 / jnp.maximum(l2, f32(1e-30)), 0.0)
        out_ref[...] = (acc1_ref[...] * inv1
                        + acc2_ref[...] * inv2).astype(out_ref.dtype)


def gat_edge_aggregate(x_r_h, x_r_t, edge_h, edge_t, rel, a_on_h, a_on_t,
                       num_rel, *, edge_tile=512):
    n, dr = x_r_h.shape
    e = int(edge_h.shape[0])
    # Edge-tile size: one full-width tile for small graphs, otherwise a
    # lane-aligned (multiple of 128) tile so the (1, TE) rel blocks are legal.
    if e <= 1024:
        te = e
    else:
        te = max(128, (int(edge_tile) // 128) * 128)
    e_pad = pl.cdiv(e, te) * te
    pad = e_pad - e

    eh = edge_h.astype(jnp.int32)
    et = edge_t.astype(jnp.int32)
    relp = rel.astype(jnp.int32)
    if pad:
        zeros = jnp.zeros((pad,), jnp.int32)
        eh = jnp.concatenate([eh, zeros])
        et = jnp.concatenate([et, zeros])
        # Padded edges get an out-of-range relation id -> excluded everywhere.
        relp = jnp.concatenate([relp, jnp.full((pad,), num_rel, jnp.int32)])
    rel_row = relp.reshape(1, e_pad)
    num_tiles = e_pad // te

    itemsize = x_r_h.dtype.itemsize
    resident = 2 * 2 * n * dr * itemsize            # x_r_h / x_r_t (+ double buffer)
    per_tile = (2 * te * dr * itemsize               # gather scratch
                + 8 * num_rel * te * 4               # membership / p temporaries
                + 2 * num_rel * dr * 4                # accumulators
                + 4 * te * 4)
    vlim = _vmem_limit(resident + per_tile)
    cost = pl.CostEstimate(
        flops=int(4 * e_pad * dr * (num_rel + 2)),
        transcendentals=int(2 * e_pad * num_rel),
        bytes_accessed=int((2 * n * dr + num_rel * dr + 4 * dr) * itemsize
                           + 3 * e_pad * 4))

    grid_spec = pltpu.PrefetchScalarGridSpec(
        num_scalar_prefetch=2,                       # eh, et -> SMEM
        grid=(num_tiles,),
        in_specs=[
            pl.BlockSpec((1, te), lambda i, eh_r, et_r: (0, i)),
            pl.BlockSpec((n, dr), lambda i, eh_r, et_r: (0, 0)),
            pl.BlockSpec((n, dr), lambda i, eh_r, et_r: (0, 0)),
            pl.BlockSpec((2, dr), lambda i, eh_r, et_r: (0, 0)),
            pl.BlockSpec((2, dr), lambda i, eh_r, et_r: (0, 0)),
        ],
        out_specs=pl.BlockSpec((num_rel, dr), lambda i, eh_r, et_r: (0, 0)),
        scratch_shapes=[
            pltpu.VMEM((te, dr), x_r_h.dtype),
            pltpu.VMEM((te, dr), x_r_h.dtype),
            pltpu.VMEM((num_rel, 1), jnp.float32),
            pltpu.VMEM((num_rel, 1), jnp.float32),
            pltpu.VMEM((num_rel, 1), jnp.float32),
            pltpu.VMEM((num_rel, 1), jnp.float32),
            pltpu.VMEM((num_rel, dr), jnp.float32),
            pltpu.VMEM((num_rel, dr), jnp.float32),
        ],
    )
    # TODO(synk): on v7x the edge axis could be split 2-way ("parallel" leading
    # axis) with per-core partial (m, l, acc) outputs flash-merged in the
    # wrapper; kept single-core here because the accumulators are carried.
    return pl.pallas_call(
        _edge_kernel,
        out_shape=jax.ShapeDtypeStruct((num_rel, dr), x_r_h.dtype),
        grid_spec=grid_spec,
        compiler_params=pltpu.CompilerParams(
            dimension_semantics=("arbitrary",),
            vmem_limit_bytes=vlim),
        cost_estimate=cost,
    )(eh, et, rel_row, x_r_h, x_r_t, a_on_h, a_on_t)


def gat_e_to_r(x_e, edge_index, rel, params, num_rel):
    """Forward pass of GAT_E_to_R. `num_rel` must equal rel.max()+1 (static)."""
    # TODO(synk): torch uses rel.max()+1 (data-dependent output rows); Pallas
    # needs a static row count, so it is passed in as `num_rel`.
    w_h, w_t, a_h1, a_h2, a_t1, a_t2 = params
    edge_h, edge_t = edge_index
    dr = w_h.shape[0]
    # Fused projection weight: one (de, 2*dr) matmul instead of two dr-wide ones.
    w_cat = jnp.concatenate([w_h.T, w_t.T], axis=1).astype(x_e.dtype)
    x_cat = gat_project(x_e, w_cat)                 # (N, 2*dr)
    x_r_h = x_cat[:, :dr]
    x_r_t = x_cat[:, dr:]
    # Attention heads, row-stacked per gathered operand:
    #   a_on_h applied to x_r_h[eh]  (rows: a_h1 for e1, a_t1 for e2)
    #   a_on_t applied to x_r_t[et]  (rows: a_h2 for e1, a_t2 for e2)
    a_on_h = jnp.stack([a_h1, a_t1], axis=0).astype(x_e.dtype)
    a_on_t = jnp.stack([a_h2, a_t2], axis=0).astype(x_e.dtype)
    return gat_edge_aggregate(x_r_h, x_r_t, edge_h, edge_t, rel,
                              a_on_h, a_on_t, num_rel)


if __name__ == "__main__":
    N, E = 8, 16                    # entities, edges
    e_hidden, r_hidden = 32, 32
    num_rel = 4

    key = jax.random.PRNGKey(0)
    (k_x, k_wh, k_wt, k_a1, k_a2, k_a3, k_a4,
     k_eh, k_et, k_rel) = jax.random.split(key, 10)

    x_e = jax.random.normal(k_x, (N, e_hidden), dtype=jnp.float32)

    def linear_weight(k, out_f, in_f):      # torch nn.Linear default init, (out, in)
        bound = 1.0 / (in_f ** 0.5)
        return jax.random.uniform(k, (out_f, in_f), jnp.float32, -bound, bound)

    w_h = linear_weight(k_wh, r_hidden, e_hidden)
    w_t = linear_weight(k_wt, r_hidden, e_hidden)
    a_h1 = linear_weight(k_a1, 1, r_hidden).reshape(r_hidden)
    a_h2 = linear_weight(k_a2, 1, r_hidden).reshape(r_hidden)
    a_t1 = linear_weight(k_a3, 1, r_hidden).reshape(r_hidden)
    a_t2 = linear_weight(k_a4, 1, r_hidden).reshape(r_hidden)

    edge_h = jax.random.randint(k_eh, (E,), 0, N, dtype=jnp.int32)
    edge_t = jax.random.randint(k_et, (E,), 0, N, dtype=jnp.int32)
    # Every relation id appears at least once, so num_rel == rel.max() + 1.
    rel = jnp.concatenate([
        jnp.arange(num_rel, dtype=jnp.int32),
        jax.random.randint(k_rel, (E - num_rel,), 0, num_rel, dtype=jnp.int32)])

    out = gat_e_to_r(x_e, (edge_h, edge_t), rel,
                     (w_h, w_t, a_h1, a_h2, a_t1, a_t2), num_rel)
    out = jax.block_until_ready(out)

    # -------------------------- pure-JAX reference --------------------------
    x_r_h = x_e @ w_h.T
    x_r_t = x_e @ w_t.T
    e1 = (x_r_h @ a_h1)[edge_h] + (x_r_t @ a_h2)[edge_t]
    e2 = (x_r_h @ a_t1)[edge_h] + (x_r_t @ a_t2)[edge_t]
    z1 = jnp.where(e1 > 0, e1, 0.01 * e1)
    z2 = jnp.where(e2 > 0, e2, 0.01 * e2)

    def seg_softmax_ref(z, seg_ids, n_seg):
        m = jax.ops.segment_max(z, seg_ids, num_segments=n_seg)
        p = jnp.exp(z - m[seg_ids])
        d = jax.ops.segment_sum(p, seg_ids, num_segments=n_seg)
        return p / d[seg_ids]

    a1 = seg_softmax_ref(z1, rel, num_rel)
    a2 = seg_softmax_ref(z2, rel, num_rel)
    ref = (jax.ops.segment_sum(a1[:, None] * x_r_h[edge_h], rel, num_segments=num_rel)
           + jax.ops.segment_sum(a2[:, None] * x_r_t[edge_t], rel, num_segments=num_rel))

    assert out.shape == (num_rel, r_hidden)
    assert jnp.allclose(out, ref, atol=5e-4, rtol=5e-4), \
        float(jnp.max(jnp.abs(out - ref)))
    print("KERNEL_OK")
</pallas_src>

<mosaic_0001>
module attributes {stable_mosaic.version = 11 : i64} {
  func.func @_proj_kernel(%arg0: i32, %arg1: memref<8x32xf32, #tpu.memory_space<vmem>>, %arg2: memref<32x64xf32, #tpu.memory_space<vmem>>, %arg3: memref<8x64xf32, #tpu.memory_space<vmem>>) attributes {dimension_semantics = [#tpu.dimension_semantics<parallel>], iteration_bounds = array<i64: 1>, scalar_prefetch = 0 : i64, scratch_operands = 0 : i64, tpu.core_type = #tpu.core_type<tc>, window_params = [{transform_indices = @transform_0, window_bounds = array<i64: 8, 32>}, {pipeline_mode = #tpu.pipeline_mode<synchronous>, transform_indices = @transform_1, window_bounds = array<i64: 32, 64>}, {transform_indices = @transform_2, window_bounds = array<i64: 8, 64>}]} {
    %c0 = arith.constant 0 : index
    %c0_0 = arith.constant 0 : index
    %0 = vector.load %arg1[%c0, %c0_0] : memref<8x32xf32, #tpu.memory_space<vmem>>, vector<8x32xf32>
    %c0_1 = arith.constant 0 : index
    %c0_2 = arith.constant 0 : index
    %1 = vector.load %arg2[%c0_1, %c0_2] : memref<32x64xf32, #tpu.memory_space<vmem>>, vector<32x64xf32>
    %cst = arith.constant dense<0.000000e+00> : vector<8x64xf32>
    %2 = tpu.matmul %0, %1, %cst {dimension_numbers = #tpu.dot_dimension_numbers<[1], [0], [0], [1], [0, 0, 1, 1], [], []>} : vector<8x32xf32>, vector<32x64xf32>, vector<8x64xf32> -> vector<8x64xf32>
    %c0_3 = arith.constant 0 : index
    %c0_4 = arith.constant 0 : index
    %3 = vector.load %arg3[%c0_3, %c0_4] : memref<8x64xf32, #tpu.memory_space<vmem>>, vector<8x64xf32>
    tpu.vector_store %arg3[%c0_3, %c0_4], %2 {strides = array<i32>} : memref<8x64xf32, #tpu.memory_space<vmem>>, vector<8x64xf32>,
    return
  }
  func.func @transform_0(%arg0: i32) -> (i32, i32) {
    %c0_i32 = arith.constant 0 : i32
    %c0_i32_0 = arith.constant 0 : i32
    return %arg0, %c0_i32 : i32, i32
  }
  func.func @transform_1(%arg0: i32) -> (i32, i32) {
    %c0_i32 = arith.constant 0 : i32
    %c0_i32_0 = arith.constant 0 : i32
    %c0_i32_1 = arith.constant 0 : i32
    return %c0_i32, %c0_i32_0 : i32, i32
  }
  func.func @transform_2(%arg0: i32) -> (i32, i32) {
    %c0_i32 = arith.constant 0 : i32
    %c0_i32_0 = arith.constant 0 : i32
    return %arg0, %c0_i32 : i32, i32
  }
}

</mosaic_0001>

<bundles_post_ra>
// kernel: tpu_custom_call.1
= control target key start
LH: loop header
LB: loop body
LE: loop exit
PB: predicated region body
PF: predicated region fallthrough
CT: control target
= control target key end

     0   :  { %7 = vsyncpa [#allocation3], 0  ;;  %s304_s0 = inlined_call_operand.hbm [shape: f32[8,32], index: 0, kind: input, shape index: {}]   ;;  %s305_s1 = inlined_call_operand.hbm [shape: f32[32,64], index: 1, kind: input, shape index: {}]   ;;  %s306_s2 = inlined_call_operand.hbm [shape: f32[8,64], index: 2, kind: output, shape index: {}]  }
   0x1   :  { %8 = vsyncpa [#allocation6], 0 }
   0x2   :  { %9 = vsyncpa [#allocation4], 0  ;;  %s238_s9 = smov [#allocation2]   ;;  %s239_s11 = smov [#allocation5]  }
   0x3   :  { %s16_s10 = sshll.u32 %s238_s9, 4  ;;  %s25_s12 = sshll.u32 %s239_s11, 4  ;;  %s17_s10 = int_to_ptr.vmem [resolvable:$true] %s16_s10  ;;  %s261_s12 = int_to_ptr.vmem [resolvable:$true] %s25_s12 }
   0x4   :  { %s166_s15 = scalar_lea.hbm %s304_s0, 128 }
   0x5   :  { %p167_p0 = scmp.ne.s32.totalorder %s304_s0, %s166_s15  ;;  %p170_p1 = scmp.lt.u32.totalorder %s166_s15, %s304_s0 }
   0x7   :  { %p172_p2 = pnand %p170_p1, %p167_p0 }
   0x9   :  { %175 = shalt.err (!%p172_p2)
}
   0xa   :  { %s176_s20 = scalar_lea.vmem %s17_s10, 128  ;;  %p181_p4 = scmp.lt.s32.totalorder %s17_s10, %s17_s10 }
   0xb   :  { %p177_p3 = scmp.ne.s32.totalorder %s17_s10, %s176_s20  ;;  %p182_p5 = scmp.lt.s32.totalorder %s176_s20, %s176_s20 }
   0xd   :  { %p183_p6 = por %p182_p5, %p181_p4 }
   0xf   :  { %p184_p7 = pnand %p183_p6, %p177_p3 }
  0x11   :  { %187 = shalt.err (!%p184_p7)
}
  0x12   :  { %19 = dma.hbm_to_vmem [thread:$0]  %s304_s0, 128, %s17_s10, [#allocation3]  }
  0x13   :  { %s188_s25 = scalar_lea.hbm %s305_s1, 512 }
  0x14   :  { %p189_p8 = scmp.ne.s32.totalorder %s305_s1, %s188_s25  ;;  %p192_p9 = scmp.lt.u32.totalorder %s188_s25, %s305_s1 }
  0x16   :  { %p194_p10 = pnand %p192_p9, %p189_p8 }
  0x18   :  { %197 = shalt.err (!%p194_p10)
}
  0x19   :  { %s198_s30 = scalar_lea.vmem %s261_s12, 512  ;;  %p203_p12 = scmp.lt.s32.totalorder %s261_s12, %s261_s12 }
  0x1a   :  { %p199_p11 = scmp.ne.s32.totalorder %s261_s12, %s198_s30  ;;  %p204_p13 = scmp.lt.s32.totalorder %s198_s30, %s198_s30 }
  0x1c   :  { %p205_p0 = por %p204_p13, %p203_p12 }
  0x1e   :  { %p206_p1 = pnand %p205_p0, %p199_p11 }
  0x20   :  { %209 = shalt.err (!%p206_p1)
}
  0x21   :  { %s240_s0 = smov 128   ;;  %s241_s3 = smov 8  }
  0x22   :  { %31 = dma.hbm_to_vmem [thread:$0]  %s305_s1, 512, %s261_s12, [#allocation6], %s240_s0, %s240_s0, %s241_s3  }
  0x23   :  { %232 = dma.done.wait [#allocation3], 128  }
  0x24   :  { %233 = vsyncadd [#allocation3], 4294967168 }
  0x25   :  { %234 = dma.done.wait [#allocation6], 512  }
  0x26   :  { %235 = vsyncadd [#allocation6], 4294966784  ;;  %v242_v0 = vmov 0.0|0.0   ;;  %vm243_vm0 = vmmov 0   ;;  %v244_v1 = vmov 0.0   ;;  %v39_v2 = vld [vmem:[#allocation5] sm:$0xff] }
  0x27   :  { %152 = vmatprep.subr.bf16.mxu0 %v242_v0  ;;  %149 = vmatprep.mubr.msk.f32.mxu0 %vm243_vm0, %v244_v1  ;;  %v40_v3 = vld [vmem:[#allocation5 + $0x8] sm:$0xff]  ;;  %v41_v4 = vld [vmem:[#allocation5 + $0x10] sm:$0xff]  ;;  %v42_v6 = vld [vmem:[#allocation5 + $0x18] sm:$0xff]  ;;  %vm43_vm1 = vcmask 261120   ;;  %s245_s1 = smov [#allocation7]   ;;  %vm117_vm2 = vcmask 523264  }
  0x28   :  { %v153_v5 = vpack.c.bf16 %v40_v3, %v39_v2  ;;  %v156_v7 = vpack.c.bf16 %v42_v6, %v41_v4  ;;  %v38_v8 = vld [vmem:[#allocation2] sm:$0xff]  ;;  %s125_s6 = sshll.u32 %s245_s1, 4  ;;  %s126_s6 = int_to_ptr.vmem [resolvable:$true] %s125_s6 }
  0x29   :  { %s210_s7 = scalar_lea.vmem %s126_s6, 128  ;;  %p215_p3 = scmp.lt.s32.totalorder %s126_s6, %s126_s6 }
  0x2a   :  { %154 = vmatpush3.bf16.msra.mxu0 %v153_v5  ;;  %p211_p2 = scmp.ne.s32.totalorder %s126_s6, %s210_s7  ;;  %p216_p4 = scmp.lt.s32.totalorder %s210_s7, %s210_s7 }
  0x2b   :  { %155 = vmatprep.subr.bf16.mxu0 %v242_v0 }
  0x2c   :  { %p217_p5 = por %p216_p4, %p215_p3 }
  0x2e   :  { %157 = vmatpush3.bf16.msra.mxu0 %v156_v7  ;;  %p218_p6 = pnand %p217_p5, %p211_p2 }
  0x31   :  { %150 = vmatmul.mubr.msk.f32.vlgmr.msra.gmra.mrb[0].mxu0 %vm43_vm1, %v38_v8 }
 0x104   :  { %v113_v9 = vpop.f32.mrb[0].mxu0 }
 0x105   :  { %v151_v10 = vpop.f32.mrb[1].mxu0  ;;  %118 = vst.msk [vmem:[#allocation7] sm:$0xff] %vm117_vm2, %v113_v9 }
 0x106   :  { %221 = shalt.err (!%p218_p6)
}
 0x107   :  { %s222_s10 = scalar_lea.hbm %s306_s2, 128 }
 0x108   :  { %p223_p7 = scmp.ne.s32.totalorder %s306_s2, %s222_s10  ;;  %p226_p8 = scmp.lt.u32.totalorder %s222_s10, %s306_s2 }
 0x10a   :  { %p228_p9 = pnand %p226_p8, %p223_p7 }
 0x10c   :  { %231 = shalt.err (!%p228_p9)
}
 0x10d   :  { %128 = dma.vmem_to_hbm [thread:$0]  %s126_s6, 128, %s306_s2, [#allocation4]  }
 0x10e   :  { %236 = dma.done.wait [#allocation4], 128  }
 0x10f   :  { %237 = vsyncadd [#allocation4], 4294967168 }
 0x110   :  { %132 = vsyncpa [#allocation3], 1 }
 0x111   :  { %133 = vsyncpa [#allocation6], 1 }
 0x112   :  { %134 = vsyncpa [#allocation4], 1 }

</bundles_post_ra>
